<compile_context>
chip_gen: v5e
topology: v5e:2x2
jax: 0.10.0
libtpu: 0.0.40
codegen_flags: <defaults>
</compile_context>

<pallas_src>
import jax
import jax.numpy as jnp
from jax import lax
from jax.experimental import pallas as pl
from jax.experimental.pallas import tpu as pltpu


def _pooler_kernel(x_ref, w_ref, b_ref, o_ref, acc_ref):
    # x_ref:   (B, tk)   first-token activations, K-slice
    # w_ref:   (tn, tk)  weight block, PyTorch (out, in) layout -- NOT transposed
    # b_ref:   (1, tn)   fused bias (linear bias + optional additive offset)
    # o_ref:   (B, tn)   output block
    # acc_ref: (B, tn)   f32 accumulator, lives across the K (last) grid axis
    k = pl.program_id(1)

    @pl.when(k == 0)
    def _():
        acc_ref[...] = jnp.zeros_like(acc_ref)

    # Contract x dim 1 with w dim 1: equivalent to x @ W.T, no transposed copy.
    acc_ref[...] += lax.dot_general(
        x_ref[...], w_ref[...],
        dimension_numbers=(((1,), (1,)), ((), ())),
        preferred_element_type=jnp.float32)

    @pl.when(k == pl.num_programs(1) - 1)
    def _():
        y = acc_ref[...] + b_ref[...].astype(jnp.float32)
        o_ref[...] = jnp.tanh(y).astype(o_ref.dtype)


def _pick_tile(dim, target=512):
    """Largest multiple-of-128 divisor of `dim` that is <= target, else full dim."""
    if dim <= target:
        return dim
    for t in range(target, 127, -128):
        if dim % t == 0:
            return t
    return dim  # falls back to full dim (still satisfies the block constraint)


def bit_pooler(hidden_states, weight, bias, offset_bias=None):
    """Pallas implementation of BitPooler.forward.

    Args:
      hidden_states: (B, S, H_in) array.
      weight:        (H_out, H_in) nn.Linear weight, PyTorch (out, in) layout (used as-is).
      bias:          (H_out,) nn.Linear bias.
      offset_bias:   optional (H_out,) additive offset ('bert.pooler.dense.bias').

    Returns:
      (B, H_out) pooled output, tanh(hidden_states[:, 0] @ W.T + bias [+ offset]).
    """
    B, S, H_in = hidden_states.shape
    H_out, H_in_w = weight.shape
    assert H_in_w == H_in, "weight must be (H_out, H_in)"
    dtype = hidden_states.dtype

    # First-token slice kept as cheap JAX glue: a seq-axis block of size 1 on a
    # (B, S, H) array would sit on the sublane dim and violate the (8,128)
    # block constraint for general S.
    first_token = hidden_states[:, 0]                         # (B, H_in)

    # Fold linear bias and the optional additive offset into one vector.
    b_eff = bias if offset_bias is None else bias + offset_bias
    b_eff = b_eff.reshape(1, H_out)

    tn = _pick_tile(H_out)
    tk = _pick_tile(H_in)
    grid = (H_out // tn, H_in // tk)                          # (N tiles, K tiles)

    itemsize = jnp.dtype(dtype).itemsize
    cost = pl.CostEstimate(
        flops=2 * B * H_out * H_in,
        transcendentals=B * H_out,
        bytes_accessed=(weight.size * jnp.dtype(weight.dtype).itemsize
                        + first_token.size * itemsize
                        + B * H_out * itemsize
                        + b_eff.size * jnp.dtype(b_eff.dtype).itemsize),
    )

    return pl.pallas_call(
        _pooler_kernel,
        out_shape=jax.ShapeDtypeStruct((B, H_out), dtype),
        grid=grid,
        in_specs=[
            pl.BlockSpec((B, tk), lambda n, k: (0, k)),       # x: K-slice
            pl.BlockSpec((tn, tk), lambda n, k: (n, k)),      # weight (out, in) block
            pl.BlockSpec((1, tn), lambda n, k: (0, n)),       # fused bias
        ],
        out_specs=pl.BlockSpec((B, tn), lambda n, k: (0, n)),
        scratch_shapes=[pltpu.VMEM((B, tn), jnp.float32)],
        compiler_params=pltpu.CompilerParams(
            dimension_semantics=("parallel", "arbitrary")),
        cost_estimate=cost,
    )(first_token, weight, b_eff)


def _reference(hidden_states, weight, bias, offset_bias=None):
    x = hidden_states[:, 0]
    y = x @ weight.T + bias
    if offset_bias is not None:
        y = y + offset_bias
    return jnp.tanh(y)


if __name__ == "__main__":
    key = jax.random.PRNGKey(0)
    B, S, H = 2, 8, 32
    k1, k2, k3, k4 = jax.random.split(key, 4)

    hidden_states = jax.random.normal(k1, (B, S, H), dtype=jnp.float32)
    weight = jax.random.normal(k2, (H, H), dtype=jnp.float32) * (1.0 / H ** 0.5)
    bias = jax.random.normal(k3, (H,), dtype=jnp.float32) * 0.1
    offset_bias = jax.random.normal(k4, (H,), dtype=jnp.float32) * 0.05

    # with offsets (offsets={'bert.pooler.dense.bias': offset_bias})
    out = jax.block_until_ready(bit_pooler(hidden_states, weight, bias, offset_bias))
    ref = _reference(hidden_states, weight, bias, offset_bias)
    assert jnp.allclose(out, ref, atol=1e-5, rtol=1e-5), "mismatch (with offsets)"

    # without offsets (offsets=None path)
    out_no = jax.block_until_ready(bit_pooler(hidden_states, weight, bias, None))
    ref_no = _reference(hidden_states, weight, bias, None)
    assert jnp.allclose(out_no, ref_no, atol=1e-5, rtol=1e-5), "mismatch (no offsets)"

    print("KERNEL_OK")
</pallas_src>

<mosaic_0001>
module attributes {stable_mosaic.version = 11 : i64} {
  func.func @_pooler_kernel(%arg0: i32, %arg1: i32, %arg2: memref<2x32xf32, #tpu.memory_space<vmem>>, %arg3: memref<32x32xf32, #tpu.memory_space<vmem>>, %arg4: memref<1x32xf32, #tpu.memory_space<vmem>>, %arg5: memref<2x32xf32, #tpu.memory_space<vmem>>, %arg6: memref<2x32xf32, #tpu.memory_space<vmem>>) attributes {dimension_semantics = [#tpu.dimension_semantics<parallel>, #tpu.dimension_semantics<arbitrary>], iteration_bounds = array<i64: 1, 1>, scalar_prefetch = 0 : i64, scratch_operands = 1 : i64, tpu.core_type = #tpu.core_type<tc>, window_params = [{transform_indices = @transform_0, window_bounds = array<i64: 2, 32>}, {transform_indices = @transform_1, window_bounds = array<i64: 32, 32>}, {transform_indices = @transform_2, window_bounds = array<i64: 1, 32>}, {transform_indices = @transform_3, window_bounds = array<i64: 2, 32>}]} {
    %c0_i32 = arith.constant 0 : i32
    %0 = arith.cmpi eq, %arg1, %c0_i32 : i32
    %1 = arith.extui %0 : i1 to i32
    %c0_i32_0 = arith.constant 0 : i32
    %2 = arith.cmpi ne, %1, %c0_i32_0 : i32
    scf.if %2 {
      %cst_10 = arith.constant 0.000000e+00 : f32
      %12 = vector.broadcast %cst_10 : f32 to vector<2x32xf32>
      %c0_11 = arith.constant 0 : index
      %c0_12 = arith.constant 0 : index
      %13 = vector.load %arg6[%c0_11, %c0_12] : memref<2x32xf32, #tpu.memory_space<vmem>>, vector<2x32xf32>
      tpu.vector_store %arg6[%c0_11, %c0_12], %12 {strides = array<i32>} : memref<2x32xf32, #tpu.memory_space<vmem>>, vector<2x32xf32>,
    } else {
    }
    %c0 = arith.constant 0 : index
    %c0_1 = arith.constant 0 : index
    %3 = vector.load %arg6[%c0, %c0_1] : memref<2x32xf32, #tpu.memory_space<vmem>>, vector<2x32xf32>
    %c0_2 = arith.constant 0 : index
    %c0_3 = arith.constant 0 : index
    %4 = vector.load %arg2[%c0_2, %c0_3] : memref<2x32xf32, #tpu.memory_space<vmem>>, vector<2x32xf32>
    %c0_4 = arith.constant 0 : index
    %c0_5 = arith.constant 0 : index
    %5 = vector.load %arg3[%c0_4, %c0_5] : memref<32x32xf32, #tpu.memory_space<vmem>>, vector<32x32xf32>
    %cst = arith.constant dense<0.000000e+00> : vector<2x32xf32>
    %6 = tpu.matmul %4, %5, %cst {dimension_numbers = #tpu.dot_dimension_numbers<[1], [1], [0], [0], [0, 0, 1, 0], [], []>} : vector<2x32xf32>, vector<32x32xf32>, vector<2x32xf32> -> vector<2x32xf32>
    %7 = arith.addf %3, %6 : vector<2x32xf32>
    %c0_6 = arith.constant 0 : index
    %c0_7 = arith.constant 0 : index
    %8 = vector.load %arg6[%c0_6, %c0_7] : memref<2x32xf32, #tpu.memory_space<vmem>>, vector<2x32xf32>
    tpu.vector_store %arg6[%c0_6, %c0_7], %7 {strides = array<i32>} : memref<2x32xf32, #tpu.memory_space<vmem>>, vector<2x32xf32>,
    %c0_i32_8 = arith.constant 0 : i32
    %9 = arith.cmpi eq, %arg1, %c0_i32_8 : i32
    %10 = arith.extui %9 : i1 to i32
    %c0_i32_9 = arith.constant 0 : i32
    %11 = arith.cmpi ne, %10, %c0_i32_9 : i32
    scf.if %11 {
      %c0_10 = arith.constant 0 : index
      %c0_11 = arith.constant 0 : index
      %12 = vector.load %arg6[%c0_10, %c0_11] : memref<2x32xf32, #tpu.memory_space<vmem>>, vector<2x32xf32>
      %c0_12 = arith.constant 0 : index
      %c0_13 = arith.constant 0 : index
      %13 = vector.load %arg4[%c0_12, %c0_13] : memref<1x32xf32, #tpu.memory_space<vmem>>, vector<1x32xf32>
      %14 = vector.broadcast %13 : vector<1x32xf32> to vector<2x32xf32>
      %15 = arith.addf %12, %14 : vector<2x32xf32>
      %16 = math.tanh %15 : vector<2x32xf32>
      %c0_14 = arith.constant 0 : index
      %c0_15 = arith.constant 0 : index
      %17 = vector.load %arg5[%c0_14, %c0_15] : memref<2x32xf32, #tpu.memory_space<vmem>>, vector<2x32xf32>
      tpu.vector_store %arg5[%c0_14, %c0_15], %16 {strides = array<i32>} : memref<2x32xf32, #tpu.memory_space<vmem>>, vector<2x32xf32>,
    } else {
    }
    return
  }
  func.func @transform_0(%arg0: i32, %arg1: i32) -> (i32, i32) {
    %c0_i32 = arith.constant 0 : i32
    %c0_i32_0 = arith.constant 0 : i32
    return %c0_i32, %arg1 : i32, i32
  }
  func.func @transform_1(%arg0: i32, %arg1: i32) -> (i32, i32) {
    %c0_i32 = arith.constant 0 : i32
    return %arg0, %arg1 : i32, i32
  }
  func.func @transform_2(%arg0: i32, %arg1: i32) -> (i32, i32) {
    %c0_i32 = arith.constant 0 : i32
    %c0_i32_0 = arith.constant 0 : i32
    return %c0_i32, %arg0 : i32, i32
  }
  func.func @transform_3(%arg0: i32, %arg1: i32) -> (i32, i32) {
    %c0_i32 = arith.constant 0 : i32
    %c0_i32_0 = arith.constant 0 : i32
    return %c0_i32, %arg0 : i32, i32
  }
}

</mosaic_0001>

<bundles_post_ra>
// kernel: tpu_custom_call.1
= control target key start
LH: loop header
LB: loop body
LE: loop exit
PB: predicated region body
PF: predicated region fallthrough
CT: control target
= control target key end

     0   :  { %8 = vsyncpa [#allocation4], 0  ;;  %s258_s0 = inlined_call_operand.hbm [shape: f32[2,32], index: 0, kind: input, shape index: {}]   ;;  %s259_s1 = inlined_call_operand.hbm [shape: f32[32,32], index: 1, kind: input, shape index: {}]   ;;  %s260_s2 = inlined_call_operand.vmem [shape: f32[1,32], index: 2, kind: input, shape index: {}]   ;;  %s261_s3 = inlined_call_operand.hbm [shape: f32[2,32], index: 3, kind: output, shape index: {}]  }
   0x1   :  { %9 = vsyncpa [#allocation7], 0 }
   0x2   :  { %10 = vsyncpa [#allocation5], 0  ;;  %s16_s14 = sshll.u32 %s258_s0, 4  ;;  %s217_s15 = smov [#allocation3]   ;;  %s17_s14 = int_to_ptr.hbm [resolvable:$true] %s16_s14 }
   0x3   :  { %s18_s16 = sshll.u32 %s217_s15, 4  ;;  %s26_s19 = sshll.u32 %s259_s1, 4  ;;  %s19_s16 = int_to_ptr.vmem [resolvable:$true] %s18_s16  ;;  %s27_s19 = int_to_ptr.hbm [resolvable:$true] %s26_s19 }
   0x4   :  { %21 = dma.hbm_to_vmem [thread:$0]  %s17_s14, 32, %s19_s16, [#allocation4]  }
   0x5   :  { %s218_s20 = smov [#allocation6]   ;;  %s219_s22 = smov 128  }
   0x6   :  { %s28_s21 = sshll.u32 %s218_s20, 4  ;;  %s220_s23 = smov 8   ;;  %s29_s21 = int_to_ptr.vmem [resolvable:$true] %s28_s21 }
   0x7   :  { %34 = dma.hbm_to_vmem [thread:$0]  %s27_s19, 512, %s29_s21, [#allocation7], %s219_s22, %s219_s22, %s220_s23  }
   0x8   :  { %211 = dma.done.wait [#allocation4], 32  }
   0x9   :  { %212 = vsyncadd [#allocation4], 4294967264 }
   0xa   :  { %213 = dma.done.wait [#allocation7], 512  }
   0xb   :  { %214 = vsyncadd [#allocation7], 4294966784  ;;  %vm49_vm0 = vcmask 254976   ;;  %v221_v0 = vmov 0.0   ;;  %vm57_vm1 = vcmask 261120   ;;  %v56_v1 = vld [vmem:[#allocation6 + $0x18] sm:$0xff] }
   0xc   :  { %50 = vst.msk [vmem:[#allocation2] sm:$0x3] %vm49_vm0, %v221_v0  ;;  %125 = vmatpush.xpose.msk.msra.mxu0 %vm57_vm1, %v56_v1  ;;  %v55_v2 = vld [vmem:[#allocation6 + $0x10] sm:$0xff]  ;;  %v54_v3 = vld [vmem:[#allocation6 + $0x8] sm:$0xff]  ;;  %v53_v4 = vld [vmem:[#allocation6] sm:$0xff]  ;;  %s222_s24 = smov [#allocation8]  }
   0xd   :  { %v52_v5 = vld [vmem:[#allocation3] sm:$0x3]  ;;  %v136_v9 = vld [vmem:[%s260_s2] ss:$0 sm:$0xff]  ;;  %s112_s25 = sshll.u32 %s222_s24, 4  ;;  %s114_s28 = sshll.u32 %s261_s3, 4  ;;  %s113_s25 = int_to_ptr.vmem [resolvable:$true] %s112_s25  ;;  %s115_s28 = int_to_ptr.hbm [resolvable:$true] %s114_s28 }
  0x10   :  { %126 = vmatpush.xpose.msk.msra.mxu0 %vm57_vm1, %v55_v2 }
  0x13   :  { %v51_v6 = vld [vmem:[#allocation2] sm:$0x3] }
  0x14   :  { %127 = vmatpush.xpose.msk.msra.mxu0 %vm57_vm1, %v54_v3 }
  0x18   :  { %128 = vmatpush.xpose.msk.msra.mxu0 %vm57_vm1, %v53_v4 }
  0x1b   :  { %129 = vmatmul.msk.f32.vlgmr.msra.gmra.mxu0 %vm57_vm1, %v52_v5 }
  0x98   :  { %v90_v7 = vpop.f32.mrf.mxu0 }
  0x99   :  { %v93_v8 = vadd.f32 %v90_v7, %v51_v6 }
  0x9b   :  { %95 = vst.msk [vmem:[#allocation2] sm:$0x3] %vm49_vm0, %v93_v8 }
  0xa2   :  { %v99_v10 = vld [vmem:[#allocation2] sm:$0x3] }
  0xa3   :  { %v104_v11 = vadd.f32 %v136_v9, %v99_v10 }
  0xa5   :  { %137 = vtanh.f32 %v104_v11 }
  0xab   :  { %v138_v12 = vpop.eup %137 }
  0xac   :  { %106 = vst.msk [vmem:[#allocation8] sm:$0x3] %vm49_vm0, %v138_v12 }
  0xad   :  { %117 = dma.vmem_to_hbm [thread:$0]  %s113_s25, 32, %s115_s28, [#allocation5]  }
  0xae   :  { %215 = dma.done.wait [#allocation5], 32  }
  0xaf   :  { %216 = vsyncadd [#allocation5], 4294967264 }
  0xb0   :  { %122 = vsyncpa [#allocation4], 1 }
  0xb1   :  { %123 = vsyncpa [#allocation7], 1 }
  0xb2   :  { %124 = vsyncpa [#allocation5], 1 }

</bundles_post_ra>
